<compile_context>
chip_gen: v7x
topology: tpu7x:2x2x1
jax: 0.10.0
libtpu: 0.0.40
codegen_flags: <defaults>
</compile_context>

<pallas_src>
import functools

import jax
import jax.numpy as jnp
from jax.experimental import pallas as pl
from jax.experimental.pallas import tpu as pltpu

_MIB = 1024 * 1024


def _round_up(x, m):
    return (x + m - 1) // m * m


def _vmem_limit_bytes(frac=0.75, fallback=64 * _MIB):
    """Scoped-VMEM limit from the chip: ~48 MiB on v7x (64 MiB physical),
    ~96 MiB on v5e/v6e (128 MiB physical), leaving compiler headroom."""
    try:
        cap = pltpu.get_tpu_info().vmem_capacity_bytes
        return int(cap * frac)
    except Exception:
        return fallback


# ----------------------------------------------------------------------------
# Kernel 1: tiled matmul + bias (backbone patchify conv in im2col form)
# ----------------------------------------------------------------------------
def _matmul_bias_kernel(x_ref, w_ref, b_ref, o_ref, acc_ref):
    """Grid (M/tm, N/tn, K/tk): f32 accumulator, bias + cast on last K step."""
    @pl.when(pl.program_id(2) == 0)
    def _init():
        acc_ref[...] = jnp.zeros_like(acc_ref)

    acc_ref[...] += jnp.dot(x_ref[...], w_ref[...],
                            preferred_element_type=jnp.float32)

    @pl.when(pl.program_id(2) == pl.num_programs(2) - 1)
    def _store():
        o_ref[...] = (acc_ref[...] + b_ref[...]).astype(o_ref.dtype)


def linear_pallas(x, w, b, *, tm=512, tk=512, tn=512, out_dtype=jnp.bfloat16):
    """(M, K) @ (K, N) + (1, N) -> (M, N) out_dtype, tiled + pipelined."""
    M, K = x.shape
    N = w.shape[1]
    # Full-dim blocks when the dim is small, otherwise aligned tiles + padding.
    tm = M if M <= tm else tm
    tk = K if K <= tk else tk
    tn = N if N <= tn else tn
    Mp, Kp, Np = _round_up(M, tm), _round_up(K, tk), _round_up(N, tn)
    if (Mp, Kp) != (M, K):
        x = jnp.pad(x, ((0, Mp - M), (0, Kp - K)))
    if (Kp, Np) != (K, N):
        w = jnp.pad(w, ((0, Kp - K), (0, Np - N)))
    if Np != N:
        b = jnp.pad(b, ((0, 0), (0, Np - N)))

    out_isz = jnp.dtype(out_dtype).itemsize
    flops = 2 * Mp * Kp * Np
    bytes_accessed = (Mp * Kp * x.dtype.itemsize + Kp * Np * w.dtype.itemsize
                      + Np * b.dtype.itemsize + Mp * Np * out_isz)

    out = pl.pallas_call(
        _matmul_bias_kernel,
        out_shape=jax.ShapeDtypeStruct((Mp, Np), out_dtype),
        grid=(Mp // tm, Np // tn, Kp // tk),
        in_specs=[pl.BlockSpec((tm, tk), lambda i, j, k: (i, k)),
                  pl.BlockSpec((tk, tn), lambda i, j, k: (k, j)),
                  pl.BlockSpec((1, tn), lambda i, j, k: (0, j))],
        out_specs=pl.BlockSpec((tm, tn), lambda i, j, k: (i, j)),
        scratch_shapes=[pltpu.VMEM((tm, tn), jnp.float32)],
        compiler_params=pltpu.CompilerParams(
            dimension_semantics=("parallel", "parallel", "arbitrary"),
            vmem_limit_bytes=_vmem_limit_bytes(),
            # let XLA fuse the im2col reshape/transpose producer into this
            # operand instead of materializing it in HBM
            allow_input_fusion=[True, False, False]),
        cost_estimate=pl.CostEstimate(flops=flops, transcendentals=0,
                                      bytes_accessed=bytes_accessed),
    )(x, w, b)
    if (Mp, Np) != (M, N):
        out = out[:M, :N]
    return out


# ----------------------------------------------------------------------------
# Kernel 2: fused in-kernel one-hot masks + mask pooling + projector MLP
# ----------------------------------------------------------------------------
def _pool_proj_kernel(ids_ref, y_ref, feat_ref, w1_ref, b1_ref, w2_ref, b2_ref,
                      pooled_ref, proj_ref):
    """Vectorized over the whole batch block:
       masks from int labels -> mask-avg pooling -> pooled out
       -> Linear(+folded BN) -> ReLU -> Linear -> proj out."""
    bb, s, _ = ids_ref.shape
    c = feat_ref.shape[-1]
    p = proj_ref.shape[-1]

    # one-hot masks on-the-fly: (bb, S, 1) ids vs (bb, 1, HW) labels
    mask = ids_ref[...] == y_ref[...]                          # (bb, S, HW)

    # mask-weighted sum on the MXU: bf16 operands (feats arrive as bf16),
    # f32 accumulation; one batched matmul for the whole batch block.
    num = jnp.einsum("bsk,bkc->bsc", mask.astype(jnp.bfloat16), feat_ref[...],
                     preferred_element_type=jnp.float32)       # (bb, S, C)
    # TODO(synk): den could be folded into the MXU (mask @ ones) to free the
    # XLU slot; kept as a reduce since it is far from the bottleneck here.
    den = jnp.sum(mask.astype(jnp.float32), axis=-1, keepdims=True) + 1e-8
    pooled = num * pl.reciprocal(den, approx=False)            # exact divide
    pooled_ref[...] = pooled.astype(pooled_ref.dtype)          # one bulk store

    # projector over all bb*S rows in one shot (fills the MXU row dimension)
    p2d = pooled.reshape(bb * s, c).astype(jnp.bfloat16)
    h = jnp.dot(p2d, w1_ref[...], preferred_element_type=jnp.float32)
    h = jnp.maximum(h + b1_ref[...], 0.0).astype(jnp.bfloat16)
    out = jnp.dot(h, w2_ref[...], preferred_element_type=jnp.float32)
    out = out + b2_ref[...]
    proj_ref[...] = out.reshape(bb, s, p).astype(proj_ref.dtype)  # bulk store


def _choose_bb(batch, num_samples, *, target_rows=256, cap=32):
    """Pick the batch block so the projector matmul M = bb*S fills the MXU
    (>=128 rows on v5e, >=256 on v6e/v7x) while keeping >=2 grid blocks for
    v7x megacore when the batch is big enough."""
    bb = max(1, min(cap, -(-target_rows // num_samples)))
    bb = min(bb, batch)
    if bb == batch and batch % 2 == 0 and (batch // 2) * num_samples >= 128:
        bb = batch // 2          # split so both v7x TensorCores get work
    return bb


def pool_project_pallas(ids, y_ds, feats_flat, w1, b1, w2, b2, *, bb=None):
    """ids: (B, S) i32 ; y_ds: (B, HW) i32 ; feats_flat: (B, HW, C) bf16
       w1: (C, Hd) bf16 (BN folded); w2: (Hd, P) bf16 ; b1/b2 f32
       -> pooled (B, S, C) f32 , proj (B, S, P) f32."""
    B, S = ids.shape
    HW = y_ds.shape[-1]
    C = feats_flat.shape[-1]
    Hd = w1.shape[1]
    P = w2.shape[1]

    if bb is None:
        bb = _choose_bb(B, S)
    Bp = _round_up(B, bb)

    ids3 = ids.reshape(B, S, 1)
    yds3 = y_ds.reshape(B, 1, HW)
    if Bp != B:
        ids3 = jnp.pad(ids3, ((0, Bp - B), (0, 0), (0, 0)))
        yds3 = jnp.pad(yds3, ((0, Bp - B), (0, 0), (0, 0)))
        feats_flat = jnp.pad(feats_flat, ((0, Bp - B), (0, 0), (0, 0)))

    flops = (2 * Bp * S * HW * C) + 2 * Bp * S * C * Hd + 2 * Bp * S * Hd * P
    bytes_accessed = (feats_flat.size * feats_flat.dtype.itemsize
                      + ids3.size * 4 + yds3.size * 4
                      + w1.size * w1.dtype.itemsize + b1.size * 4
                      + w2.size * w2.dtype.itemsize + b2.size * 4
                      + Bp * S * (C + P) * 4)

    pooled, proj = pl.pallas_call(
        _pool_proj_kernel,
        out_shape=(jax.ShapeDtypeStruct((Bp, S, C), jnp.float32),
                   jax.ShapeDtypeStruct((Bp, S, P), jnp.float32)),
        grid=(Bp // bb,),
        in_specs=[pl.BlockSpec((bb, S, 1), lambda g: (g, 0, 0)),
                  pl.BlockSpec((bb, 1, HW), lambda g: (g, 0, 0)),
                  pl.BlockSpec((bb, HW, C), lambda g: (g, 0, 0)),
                  # projector weights: constant block index -> Pallas skips
                  # the re-DMA after grid step 0 (VMEM-resident weights).
                  # TODO(synk): at production sizes on v7x (64 MiB VMEM) use
                  # pipeline_mode=pl.Buffered(1) here so the ~16 MiB w1 is
                  # not double-buffered.
                  pl.BlockSpec((C, Hd), lambda g: (0, 0)),
                  pl.BlockSpec((1, Hd), lambda g: (0, 0)),
                  pl.BlockSpec((Hd, P), lambda g: (0, 0)),
                  pl.BlockSpec((1, P), lambda g: (0, 0))],
        out_specs=(pl.BlockSpec((bb, S, C), lambda g: (g, 0, 0)),
                   pl.BlockSpec((bb, S, P), lambda g: (g, 0, 0))),
        compiler_params=pltpu.CompilerParams(
            dimension_semantics=("parallel",),
            vmem_limit_bytes=_vmem_limit_bytes()),
        cost_estimate=pl.CostEstimate(flops=flops, transcendentals=Bp * S,
                                      bytes_accessed=bytes_accessed),
    )(ids3, yds3, feats_flat, w1, b1, w2, b2)

    if Bp != B:
        pooled, proj = pooled[:B], proj[:B]
    return pooled, proj


# ----------------------------------------------------------------------------
# DetConB forward (network branch)
# ----------------------------------------------------------------------------
def init_params(key, *, cin, downsample, c_feat, hidden, proj):
    ks = jax.random.split(key, 3)
    k_patch = downsample * downsample * cin
    return {
        "w_conv": 0.02 * jax.random.normal(ks[0], (k_patch, c_feat), jnp.float32),
        "b_conv": jnp.zeros((1, c_feat), jnp.float32),
        "w1": 0.02 * jax.random.normal(ks[1], (c_feat, hidden), jnp.float32),
        "b1": jnp.zeros((1, hidden), jnp.float32),
        "bn_gamma": jnp.ones((1, hidden), jnp.float32),
        "bn_beta": jnp.zeros((1, hidden), jnp.float32),
        "bn_mean": jnp.zeros((1, hidden), jnp.float32),
        "bn_var": jnp.ones((1, hidden), jnp.float32),
        "w2": 0.02 * jax.random.normal(ks[2], (hidden, proj), jnp.float32),
        "b2": jnp.zeros((1, proj), jnp.float32),
    }


@functools.partial(jax.jit, static_argnames=("downsample", "num_samples",
                                              "num_classes"))
def detconb_forward(params, x, y, *, downsample, num_samples, num_classes):
    """x: (B, H, W, Cin) f32 image ; y: (B, H, W) int32 label map."""
    B, H, W, Cin = x.shape
    ds = downsample
    h, w = H // ds, W // ds
    c_feat = params["w_conv"].shape[1]

    # ---- backbone stand-in: patchify conv = im2col + tiled Pallas matmul ----
    # (allow_input_fusion on the patches operand lets XLA fuse this
    #  reshape/transpose into the pallas_call instead of an HBM round trip)
    patches = x.reshape(B, h, ds, w, ds, Cin)
    patches = patches.transpose(0, 1, 3, 2, 4, 5).reshape(B * h * w,
                                                          ds * ds * Cin)
    feats_flat = linear_pallas(patches.astype(jnp.bfloat16),
                               params["w_conv"].astype(jnp.bfloat16),
                               params["b_conv"],
                               out_dtype=jnp.bfloat16)          # bf16 feats
    feats = feats_flat.reshape(B, h, w, c_feat)

    # ---- mask ids + downsampled int32 labels (masks are built in-kernel) ----
    # TODO(synk): original DetCon samples mask ids stochastically by area;
    # deterministic ids are used here.
    ids = jnp.tile(jnp.arange(num_samples, dtype=jnp.int32)[None, :] %
                   num_classes, (B, 1))                          # (B, S)
    y_ds = y[:, ::ds, ::ds].reshape(B, h * w)                    # nearest ds

    # ---- fold BatchNorm1d (eval) into the first projector layer -------------
    bn_scale = params["bn_gamma"] * jax.lax.rsqrt(params["bn_var"] + 1e-5)
    bn_shift = params["bn_beta"] - params["bn_mean"] * bn_scale
    w1_eff = params["w1"] * bn_scale
    b1_eff = params["b1"] * bn_scale + bn_shift

    # ---- fused mask pooling + projector MLP (single Pallas kernel) ----------
    pooled, proj = pool_project_pallas(
        ids, y_ds, feats.reshape(B, h * w, c_feat),
        w1_eff.astype(jnp.bfloat16), b1_eff,
        params["w2"].astype(jnp.bfloat16), params["b2"])

    return feats, proj, pooled, ids


# ----------------------------------------------------------------------------
if __name__ == "__main__":
    # Small but lane-aligned toy config (feature dims multiples of 128);
    # production dims (c_feat~2048, hidden=4096, proj=256, downsample=32)
    # flow through the same tiled kernels.
    B, H, W, Cin = 2, 32, 32, 3
    downsample = 4
    c_feat = 128
    hidden = 256
    proj_dim = 128
    num_classes = 15
    num_samples = 8

    key = jax.random.PRNGKey(0)
    kx, ky, kp = jax.random.split(key, 3)
    x = jax.random.normal(kx, (B, H, W, Cin), jnp.float32)
    y = jax.random.randint(ky, (B, H, W), 0, num_classes, jnp.int32)

    params = init_params(kp, cin=Cin, downsample=downsample, c_feat=c_feat,
                         hidden=hidden, proj=proj_dim)

    feats, proj, pooled, ids = detconb_forward(
        params, x, y, downsample=downsample, num_samples=num_samples,
        num_classes=num_classes)
    jax.block_until_ready((feats, proj, pooled, ids))

    assert feats.shape == (B, H // downsample, W // downsample, c_feat)
    assert proj.shape == (B, num_samples, proj_dim)
    assert pooled.shape == (B, num_samples, c_feat)
    assert ids.shape == (B, num_samples)
    assert bool(jnp.all(jnp.isfinite(proj)))
    assert bool(jnp.all(jnp.isfinite(pooled)))
    print("KERNEL_OK")
</pallas_src>

<mosaic_0001>
module attributes {stable_mosaic.version = 11 : i64} {
  func.func @_matmul_bias_kernel(%arg0: i32, %arg1: i32, %arg2: i32, %arg3: memref<128x48xbf16, #tpu.memory_space<vmem>>, %arg4: memref<48x128xbf16, #tpu.memory_space<vmem>>, %arg5: memref<1x128xf32, #tpu.memory_space<vmem>>, %arg6: memref<128x128xbf16, #tpu.memory_space<vmem>>, %arg7: memref<128x128xf32, #tpu.memory_space<vmem>>) attributes {dimension_semantics = [#tpu.dimension_semantics<parallel>, #tpu.dimension_semantics<parallel>, #tpu.dimension_semantics<arbitrary>], iteration_bounds = array<i64: 1, 1, 1>, scalar_prefetch = 0 : i64, scratch_operands = 1 : i64, tpu.core_type = #tpu.core_type<tc>, window_params = [{transform_indices = @transform_0, window_bounds = array<i64: 128, 48>}, {transform_indices = @transform_1, window_bounds = array<i64: 48, 128>}, {transform_indices = @transform_2, window_bounds = array<i64: 1, 128>}, {transform_indices = @transform_3, window_bounds = array<i64: 128, 128>}]} {
    %c0_i32 = arith.constant 0 : i32
    %0 = arith.cmpi eq, %arg2, %c0_i32 : i32
    %1 = arith.extui %0 : i1 to i32
    %c0_i32_0 = arith.constant 0 : i32
    %2 = arith.cmpi ne, %1, %c0_i32_0 : i32
    scf.if %2 {
      %cst_10 = arith.constant 0.000000e+00 : f32
      %12 = vector.broadcast %cst_10 : f32 to vector<128x128xf32>
      %c0_11 = arith.constant 0 : index
      %c0_12 = arith.constant 0 : index
      %13 = vector.load %arg7[%c0_11, %c0_12] : memref<128x128xf32, #tpu.memory_space<vmem>>, vector<128x128xf32>
      tpu.vector_store %arg7[%c0_11, %c0_12], %12 {strides = array<i32>} : memref<128x128xf32, #tpu.memory_space<vmem>>, vector<128x128xf32>,
    } else {
    }
    %c0 = arith.constant 0 : index
    %c0_1 = arith.constant 0 : index
    %3 = vector.load %arg7[%c0, %c0_1] : memref<128x128xf32, #tpu.memory_space<vmem>>, vector<128x128xf32>
    %c0_2 = arith.constant 0 : index
    %c0_3 = arith.constant 0 : index
    %4 = vector.load %arg3[%c0_2, %c0_3] : memref<128x48xbf16, #tpu.memory_space<vmem>>, vector<128x48xbf16>
    %c0_4 = arith.constant 0 : index
    %c0_5 = arith.constant 0 : index
    %5 = vector.load %arg4[%c0_4, %c0_5] : memref<48x128xbf16, #tpu.memory_space<vmem>>, vector<48x128xbf16>
    %cst = arith.constant dense<0.000000e+00> : vector<128x128xf32>
    %6 = tpu.matmul %4, %5, %cst {dimension_numbers = #tpu.dot_dimension_numbers<[1], [0], [0], [1], [0, 0, 1, 1], [], []>} : vector<128x48xbf16>, vector<48x128xbf16>, vector<128x128xf32> -> vector<128x128xf32>
    %7 = arith.addf %3, %6 : vector<128x128xf32>
    %c0_6 = arith.constant 0 : index
    %c0_7 = arith.constant 0 : index
    %8 = vector.load %arg7[%c0_6, %c0_7] : memref<128x128xf32, #tpu.memory_space<vmem>>, vector<128x128xf32>
    tpu.vector_store %arg7[%c0_6, %c0_7], %7 {strides = array<i32>} : memref<128x128xf32, #tpu.memory_space<vmem>>, vector<128x128xf32>,
    %c0_i32_8 = arith.constant 0 : i32
    %9 = arith.cmpi eq, %arg2, %c0_i32_8 : i32
    %10 = arith.extui %9 : i1 to i32
    %c0_i32_9 = arith.constant 0 : i32
    %11 = arith.cmpi ne, %10, %c0_i32_9 : i32
    scf.if %11 {
      %c0_10 = arith.constant 0 : index
      %c0_11 = arith.constant 0 : index
      %12 = vector.load %arg7[%c0_10, %c0_11] : memref<128x128xf32, #tpu.memory_space<vmem>>, vector<128x128xf32>
      %c0_12 = arith.constant 0 : index
      %c0_13 = arith.constant 0 : index
      %13 = vector.load %arg5[%c0_12, %c0_13] : memref<1x128xf32, #tpu.memory_space<vmem>>, vector<1x128xf32>
      %14 = vector.broadcast %13 : vector<1x128xf32> to vector<128x128xf32>
      %15 = arith.addf %12, %14 : vector<128x128xf32>
      %16 = arith.truncf %15 : vector<128x128xf32> to vector<128x128xbf16>
      %c0_14 = arith.constant 0 : index
      %c0_15 = arith.constant 0 : index
      %17 = vector.load %arg6[%c0_14, %c0_15] : memref<128x128xbf16, #tpu.memory_space<vmem>>, vector<128x128xbf16>
      tpu.vector_store %arg6[%c0_14, %c0_15], %16 {strides = array<i32>} : memref<128x128xbf16, #tpu.memory_space<vmem>>, vector<128x128xbf16>,
    } else {
    }
    return
  }
  func.func @transform_0(%arg0: i32, %arg1: i32, %arg2: i32) -> (i32, i32) {
    %c0_i32 = arith.constant 0 : i32
    return %arg0, %arg2 : i32, i32
  }
  func.func @transform_1(%arg0: i32, %arg1: i32, %arg2: i32) -> (i32, i32) {
    %c0_i32 = arith.constant 0 : i32
    return %arg2, %arg1 : i32, i32
  }
  func.func @transform_2(%arg0: i32, %arg1: i32, %arg2: i32) -> (i32, i32) {
    %c0_i32 = arith.constant 0 : i32
    %c0_i32_0 = arith.constant 0 : i32
    return %c0_i32, %arg1 : i32, i32
  }
  func.func @transform_3(%arg0: i32, %arg1: i32, %arg2: i32) -> (i32, i32) {
    %c0_i32 = arith.constant 0 : i32
    return %arg0, %arg1 : i32, i32
  }
}

module attributes {stable_mosaic.version = 11 : i64} {
  func.func @_pool_proj_kernel(%arg0: i32, %arg1: memref<2x8x1xi32, #tpu.memory_space<vmem>>, %arg2: memref<2x1x64xi32, #tpu.memory_space<vmem>>, %arg3: memref<2x64x128xbf16, #tpu.memory_space<vmem>>, %arg4: memref<128x256xbf16, #tpu.memory_space<vmem>>, %arg5: memref<1x256xf32, #tpu.memory_space<vmem>>, %arg6: memref<256x128xbf16, #tpu.memory_space<vmem>>, %arg7: memref<1x128xf32, #tpu.memory_space<vmem>>, %arg8: memref<2x8x128xf32, #tpu.memory_space<vmem>>, %arg9: memref<2x8x128xf32, #tpu.memory_space<vmem>>) attributes {dimension_semantics = [#tpu.dimension_semantics<parallel>], iteration_bounds = array<i64: 1>, scalar_prefetch = 0 : i64, scratch_operands = 0 : i64, tpu.core_type = #tpu.core_type<tc>, window_params = [{transform_indices = @transform_0, window_bounds = array<i64: 2, 8, 1>}, {transform_indices = @transform_1, window_bounds = array<i64: 2, 1, 64>}, {transform_indices = @transform_2, window_bounds = array<i64: 2, 64, 128>}, {pipeline_mode = #tpu.pipeline_mode<synchronous>, transform_indices = @transform_3, window_bounds = array<i64: 128, 256>}, {pipeline_mode = #tpu.pipeline_mode<synchronous>, transform_indices = @transform_4, window_bounds = array<i64: 1, 256>}, {pipeline_mode = #tpu.pipeline_mode<synchronous>, transform_indices = @transform_5, window_bounds = array<i64: 256, 128>}, {pipeline_mode = #tpu.pipeline_mode<synchronous>, transform_indices = @transform_6, window_bounds = array<i64: 1, 128>}, {transform_indices = @transform_7, window_bounds = array<i64: 2, 8, 128>}, {transform_indices = @transform_8, window_bounds = array<i64: 2, 8, 128>}]} {
    %c0 = arith.constant 0 : index
    %c0_0 = arith.constant 0 : index
    %c0_1 = arith.constant 0 : index
    %0 = vector.load %arg1[%c0, %c0_0, %c0_1] : memref<2x8x1xi32, #tpu.memory_space<vmem>>, vector<2x8x1xi32>
    %c0_2 = arith.constant 0 : index
    %c0_3 = arith.constant 0 : index
    %c0_4 = arith.constant 0 : index
    %1 = vector.load %arg2[%c0_2, %c0_3, %c0_4] : memref<2x1x64xi32, #tpu.memory_space<vmem>>, vector<2x1x64xi32>
    %2 = vector.broadcast %0 : vector<2x8x1xi32> to vector<2x8x64xi32>
    %3 = vector.broadcast %1 : vector<2x1x64xi32> to vector<2x8x64xi32>
    %4 = arith.cmpi eq, %2, %3 : vector<2x8x64xi32>
    %5 = arith.extui %4 : vector<2x8x64xi1> to vector<2x8x64xi32>
    %6 = arith.sitofp %5 : vector<2x8x64xi32> to vector<2x8x64xf32>
    %7 = arith.truncf %6 : vector<2x8x64xf32> to vector<2x8x64xbf16>
    %c0_5 = arith.constant 0 : index
    %c0_6 = arith.constant 0 : index
    %c0_7 = arith.constant 0 : index
    %8 = vector.load %arg3[%c0_5, %c0_6, %c0_7] : memref<2x64x128xbf16, #tpu.memory_space<vmem>>, vector<2x64x128xbf16>
    "tpu.trace_start"() <{level = 10 : i32, message = "bsk,bkc->bsc"}> : () -> ()
    %cst = arith.constant dense<0.000000e+00> : vector<2x8x128xf32>
    %9 = tpu.matmul %7, %8, %cst {dimension_numbers = #tpu.dot_dimension_numbers<[2], [1], [1], [2], [0, 0, 0, 1, 1, 2], [0], [0]>} : vector<2x8x64xbf16>, vector<2x64x128xbf16>, vector<2x8x128xf32> -> vector<2x8x128xf32>
    "tpu.trace_stop"() : () -> ()
    %10 = arith.extui %4 : vector<2x8x64xi1> to vector<2x8x64xi32>
    %11 = arith.sitofp %10 : vector<2x8x64xi32> to vector<2x8x64xf32>
    %cst_8 = arith.constant dense<0.000000e+00> : vector<2x8xf32>
    %12 = vector.multi_reduction <add>, %11, %cst_8 [2] : vector<2x8x64xf32> to vector<2x8xf32>
    %13 = vector.shape_cast %12 : vector<2x8xf32> to vector<2x8x1xf32>
    %cst_9 = arith.constant 9.99999993E-9 : f32
    %14 = vector.broadcast %cst_9 : f32 to vector<2x8x1xf32>
    %15 = arith.addf %13, %14 : vector<2x8x1xf32>
    %16 = tpu.reciprocal %15 : vector<2x8x1xf32> -> vector<2x8x1xf32>
    %17 = vector.broadcast %16 : vector<2x8x1xf32> to vector<2x8x128xf32>
    %18 = arith.mulf %9, %17 : vector<2x8x128xf32>
    %c0_10 = arith.constant 0 : index
    %c0_11 = arith.constant 0 : index
    %c0_12 = arith.constant 0 : index
    %19 = vector.load %arg8[%c0_10, %c0_11, %c0_12] : memref<2x8x128xf32, #tpu.memory_space<vmem>>, vector<2x8x128xf32>
    tpu.vector_store %arg8[%c0_10, %c0_11, %c0_12], %18 {strides = array<i32>} : memref<2x8x128xf32, #tpu.memory_space<vmem>>, vector<2x8x128xf32>,
    %20 = vector.shape_cast %18 : vector<2x8x128xf32> to vector<16x128xf32>
    %21 = arith.truncf %20 : vector<16x128xf32> to vector<16x128xbf16>
    %c0_13 = arith.constant 0 : index
    %c0_14 = arith.constant 0 : index
    %22 = vector.load %arg4[%c0_13, %c0_14] : memref<128x256xbf16, #tpu.memory_space<vmem>>, vector<128x256xbf16>
    %cst_15 = arith.constant dense<0.000000e+00> : vector<16x256xf32>
    %23 = tpu.matmul %21, %22, %cst_15 {dimension_numbers = #tpu.dot_dimension_numbers<[1], [0], [0], [1], [0, 0, 1, 1], [], []>} : vector<16x128xbf16>, vector<128x256xbf16>, vector<16x256xf32> -> vector<16x256xf32>
    %c0_16 = arith.constant 0 : index
    %c0_17 = arith.constant 0 : index
    %24 = vector.load %arg5[%c0_16, %c0_17] : memref<1x256xf32, #tpu.memory_space<vmem>>, vector<1x256xf32>
    %25 = vector.broadcast %24 : vector<1x256xf32> to vector<16x256xf32>
    %26 = arith.addf %23, %25 : vector<16x256xf32>
    %cst_18 = arith.constant 0.000000e+00 : f32
    %27 = vector.broadcast %cst_18 : f32 to vector<16x256xf32>
    %28 = arith.maximumf %26, %27 : vector<16x256xf32>
    %29 = arith.truncf %28 : vector<16x256xf32> to vector<16x256xbf16>
    %c0_19 = arith.constant 0 : index
    %c0_20 = arith.constant 0 : index
    %30 = vector.load %arg6[%c0_19, %c0_20] : memref<256x128xbf16, #tpu.memory_space<vmem>>, vector<256x128xbf16>
    %cst_21 = arith.constant dense<0.000000e+00> : vector<16x128xf32>
    %31 = tpu.matmul %29, %30, %cst_21 {dimension_numbers = #tpu.dot_dimension_numbers<[1], [0], [0], [1], [0, 0, 1, 1], [], []>} : vector<16x256xbf16>, vector<256x128xbf16>, vector<16x128xf32> -> vector<16x128xf32>
    %c0_22 = arith.constant 0 : index
    %c0_23 = arith.constant 0 : index
    %32 = vector.load %arg7[%c0_22, %c0_23] : memref<1x128xf32, #tpu.memory_space<vmem>>, vector<1x128xf32>
    %33 = vector.broadcast %32 : vector<1x128xf32> to vector<16x128xf32>
    %34 = arith.addf %31, %33 : vector<16x128xf32>
    %35 = vector.shape_cast %34 : vector<16x128xf32> to vector<2x8x128xf32>
    %c0_24 = arith.constant 0 : index
    %c0_25 = arith.constant 0 : index
    %c0_26 = arith.constant 0 : index
    %36 = vector.load %arg9[%c0_24, %c0_25, %c0_26] : memref<2x8x128xf32, #tpu.memory_space<vmem>>, vector<2x8x128xf32>
    tpu.vector_store %arg9[%c0_24, %c0_25, %c0_26], %35 {strides = array<i32>} : memref<2x8x128xf32, #tpu.memory_space<vmem>>, vector<2x8x128xf32>,
    return
  }
  func.func @transform_0(%arg0: i32) -> (i32, i32, i32) {
    %c0_i32 = arith.constant 0 : i32
    %c0_i32_0 = arith.constant 0 : i32
    %c0_i32_1 = arith.constant 0 : i32
    return %arg0, %c0_i32, %c0_i32_0 : i32, i32, i32
  }
  func.func @transform_1(%arg0: i32) -> (i32, i32, i32) {
    %c0_i32 = arith.constant 0 : i32
    %c0_i32_0 = arith.constant 0 : i32
    %c0_i32_1 = arith.constant 0 : i32
    return %arg0, %c0_i32, %c0_i32_0 : i32, i32, i32
  }
  func.func @transform_2(%arg0: i32) -> (i32, i32, i32) {
    %c0_i32 = arith.constant 0 : i32
    %c0_i32_0 = arith.constant 0 : i32
    %c0_i32_1 = arith.constant 0 : i32
    return %arg0, %c0_i32, %c0_i32_0 : i32, i32, i32
  }
  func.func @transform_3(%arg0: i32) -> (i32, i32) {
    %c0_i32 = arith.constant 0 : i32
    %c0_i32_0 = arith.constant 0 : i32
    %c0_i32_1 = arith.constant 0 : i32
    return %c0_i32, %c0_i32_0 : i32, i32
  }
  func.func @transform_4(%arg0: i32) -> (i32, i32) {
    %c0_i32 = arith.constant 0 : i32
    %c0_i32_0 = arith.constant 0 : i32
    %c0_i32_1 = arith.constant 0 : i32
    return %c0_i32, %c0_i32_0 : i32, i32
  }
  func.func @transform_5(%arg0: i32) -> (i32, i32) {
    %c0_i32 = arith.constant 0 : i32
    %c0_i32_0 = arith.constant 0 : i32
    %c0_i32_1 = arith.constant 0 : i32
    return %c0_i32, %c0_i32_0 : i32, i32
  }
  func.func @transform_6(%arg0: i32) -> (i32, i32) {
    %c0_i32 = arith.constant 0 : i32
    %c0_i32_0 = arith.constant 0 : i32
    %c0_i32_1 = arith.constant 0 : i32
    return %c0_i32, %c0_i32_0 : i32, i32
  }
  func.func @transform_7(%arg0: i32) -> (i32, i32, i32) {
    %c0_i32 = arith.constant 0 : i32
    %c0_i32_0 = arith.constant 0 : i32
    %c0_i32_1 = arith.constant 0 : i32
    return %arg0, %c0_i32, %c0_i32_0 : i32, i32, i32
  }
  func.func @transform_8(%arg0: i32) -> (i32, i32, i32) {
    %c0_i32 = arith.constant 0 : i32
    %c0_i32_0 = arith.constant 0 : i32
    %c0_i32_1 = arith.constant 0 : i32
    return %arg0, %c0_i32, %c0_i32_0 : i32, i32, i32
  }
}

</mosaic_0001>

<bundles_post_ra>
// kernel: detconb_forward.2
= control target key start
LH: loop header
LB: loop body
LE: loop exit
PB: predicated region body
PF: predicated region fallthrough
CT: control target
= control target key end

     0   :  { %8 = vsyncpa [#allocation4], 0  ;;  %s812_s0 = inlined_call_operand.hbm [shape: bf16[128,48], index: 0, kind: input, shape index: {}]   ;;  %s813_s1 = inlined_call_operand.hbm [shape: bf16[48,128], index: 1, kind: input, shape index: {}]   ;;  %s814_s2 = inlined_call_operand.hbm [shape: f32[1,128], index: 2, kind: input, shape index: {}]   ;;  %s815_s3 = inlined_call_operand.hbm [shape: bf16[128,128], index: 3, kind: output, shape index: {}]  }
   0x1   :  { %9 = vsyncpa [#allocation7], 0 }
   0x2   :  { %10 = vsyncpa [#allocation5], 0  ;;  %s714_s12 = smov [#allocation6]   ;;  %s715_s14 = smov [#allocation3]  }
   0x3   :  { %s28_s13 = sshll.u32 %s714_s12, 4  ;;  %s16_s15 = sshll.u32 %s715_s14, 4  ;;  %s29_s13 = int_to_ptr.vmem [resolvable:$true] %s28_s13  ;;  %s740_s15 = int_to_ptr.vmem [resolvable:$true] %s16_s15 }
   0x4   :  { %s620_s18 = scalar_lea.hbm %s813_s1, 384 }
   0x5   :  { %p621_p0 = scmp.ne.s32.totalorder %s813_s1, %s620_s18  ;;  %p624_p1 = scmp.lt.u32.totalorder %s620_s18, %s813_s1 }
   0x7   :  { %p626_p2 = pnand %p624_p1, %p621_p0 }
   0x9   :  { %629 = shalt.err (!%p626_p2)
}
   0xa   :  { %s630_s23 = scalar_lea.vmem %s29_s13, 384  ;;  %p635_p4 = scmp.lt.s32.totalorder %s29_s13, %s29_s13 }
   0xb   :  { %p631_p3 = scmp.ne.s32.totalorder %s29_s13, %s630_s23  ;;  %p636_p5 = scmp.lt.s32.totalorder %s630_s23, %s630_s23 }
   0xd   :  { %p637_p6 = por %p636_p5, %p635_p4 }
   0xf   :  { %p638_p7 = pnand %p637_p6, %p631_p3 }
  0x11   :  { %641 = shalt.err (!%p638_p7)
}
  0x12   :  { %s716_s24 = smov 64   ;;  %s717_s25 = smov 4  }
  0x13   :  { %34 = dma.hbm_to_vmem [thread:$0]  %s813_s1, 384, %s29_s13, [#allocation7], %s716_s24, %s716_s24, %s717_s25  }
  0x14   :  { %s642_s30 = scalar_lea.hbm %s812_s0, 1024 }
  0x15   :  { %p643_p8 = scmp.ne.s32.totalorder %s812_s0, %s642_s30  ;;  %p646_p9 = scmp.lt.u32.totalorder %s642_s30, %s812_s0 }
  0x17   :  { %p648_p10 = pnand %p646_p9, %p643_p8 }
  0x19   :  { %651 = shalt.err (!%p648_p10)
}
  0x1a   :  { %s652_s8 = scalar_lea.vmem %s740_s15, 1024  ;;  %p657_p12 = scmp.lt.s32.totalorder %s740_s15, %s740_s15 }
  0x1b   :  { %p653_p11 = scmp.ne.s32.totalorder %s740_s15, %s652_s8  ;;  %p658_p13 = scmp.lt.s32.totalorder %s652_s8, %s652_s8 }
  0x1d   :  { %p659_p0 = por %p658_p13, %p657_p12 }
  0x1f   :  { %p660_p1 = pnand %p659_p0, %p653_p11 }
  0x21   :  { %663 = shalt.err (!%p660_p1)
}
  0x22   :  { %22 = dma.hbm_to_vmem [thread:$0]  %s812_s0, 1024, %s740_s15, [#allocation4], %s716_s24, %s716_s24, %s717_s25  }
  0x23   :  { %s718_s10 = smov [#allocation8]   ;;  %s664_s14 = scalar_lea.hbm %s814_s2, 16 }
  0x24   :  { %s41_s11 = sshll.u32 %s718_s10, 4  ;;  %p665_p2 = scmp.ne.s32.totalorder %s814_s2, %s664_s14  ;;  %s42_s11 = int_to_ptr.vmem [resolvable:$true] %s41_s11 }
  0x25   :  { %p668_p3 = scmp.lt.u32.totalorder %s664_s14, %s814_s2 }
  0x27   :  { %p670_p4 = pnand %p668_p3, %p665_p2 }
  0x29   :  { %673 = shalt.err (!%p670_p4)
}
  0x2a   :  { %s674_s20 = scalar_lea.vmem %s42_s11, 16  ;;  %s678_s0 = scalar_lea.vmem %s42_s11, 32 }
  0x2b   :  { %p675_p5 = scmp.ne.s32.totalorder %s42_s11, %s674_s20  ;;  %p679_p6 = scmp.lt.s32.totalorder %s42_s11, %s42_s11 }
  0x2c   :  { %p680_p7 = scmp.lt.s32.totalorder %s678_s0, %s674_s20 }
  0x2e   :  { %p681_p8 = por %p680_p7, %p679_p6 }
  0x30   :  { %p682_p9 = pnand %p681_p8, %p675_p5 }
  0x32   :  { %685 = shalt.err (!%p682_p9)
}
  0x33   :  { %44 = dma.hbm_to_vmem [thread:$0]  %s814_s2, 16, %s42_s11, [#allocation7]  }
  0x34   :  { %708 = dma.done.wait [#allocation4], 1024  }
  0x35   :  { %709 = vsyncadd [#allocation4], 4294966272 }
  0x36   :  { %710 = dma.done.wait [#allocation7], 400  }
  0x37   :  { %711 = vsyncadd [#allocation7], 4294966896  ;;  %v609_v0 = vld [vmem:[#allocation6] sm:$0xff]   ;;  %v610_v1 = vld [vmem:[#allocation6 + $0x8] sm:$0xff]   ;;  %vm171_vm0 = vcmask 392192   ;;  %s719_s2 = smov [#allocation9]  }
  0x38   :  { %575 = vmatprep.subr.bf16.mxu0 %v609_v0  ;;  %597 = vmatprep.subr.bf16.mxu1 %v609_v0  ;;  %v611_v2 = vld [vmem:[#allocation6 + $0x10] sm:$0xff]   ;;  %v612_v3 = vld [vmem:[#allocation3] sm:$0xff]   ;;  %v614_v5 = vld [vmem:[#allocation3 + $0x8] sm:$0xff]   ;;  %s452_s22 = sshll.u32 %s719_s2, 4  ;;  %s453_s22 = int_to_ptr.vmem [resolvable:$true] %s452_s22 }
  0x39   :  { %576 = vmatpush3.bf16.msra.mxu0 %v609_v0  ;;  %600 = vmatpush3.bf16.msra.mxu1 %v609_v0  ;;  %v613_v4 = vld [vmem:[#allocation3 + $0x20] sm:$0xff]   ;;  %v615_v6 = vld [vmem:[#allocation3 + $0x28] sm:$0xff]   ;;  %v616_v7 = vld [vmem:[#allocation3 + $0x10] sm:$0xff]   ;;  %s686_s23 = scalar_lea.vmem %s453_s22, 1024  ;;  %p691_p11 = scmp.lt.s32.totalorder %s453_s22, %s453_s22 }
  0x3a   :  { %577 = vmatprep.subr.bf16.mxu0 %v610_v1  ;;  %598 = vmatprep.subr.bf16.mxu1 %v610_v1  ;;  %v617_v8 = vld [vmem:[#allocation3 + $0x30] sm:$0xff]   ;;  %v618_v9 = vld [vmem:[#allocation3 + $0x18] sm:$0xff]   ;;  %p687_p10 = scmp.ne.s32.totalorder %s453_s22, %s686_s23  ;;  %p692_p12 = scmp.lt.s32.totalorder %s686_s23, %s686_s23 }
  0x3b   :  { %581 = vmatprep.mubr.msk.bf16.mxu0 %vm171_vm0, %v612_v3  ;;  %589 = vmatprep.mubr.msk.bf16.mxu1 %vm171_vm0, %v613_v4  ;;  %v619_v10 = vld [vmem:[#allocation3 + $0x38] sm:$0xff]  }
  0x3c   :  { %v484_v12 = vld [vmem:[#allocation8] ss:$0 sm:$0xff]  ;;  %p693_p13 = por %p692_p12, %p691_p11 }
  0x3d   :  { %578 = vmatpush3.bf16.msra.mxu0 %v610_v1  ;;  %601 = vmatpush3.bf16.msra.mxu1 %v610_v1 }
  0x3e   :  { %579 = vmatprep.subr.bf16.mxu0 %v611_v2  ;;  %599 = vmatprep.subr.bf16.mxu1 %v611_v2  ;;  %p694_p0 = pnand %p693_p13, %p687_p10 }
  0x41   :  { %580 = vmatpush3.bf16.msra.mxu0 %v611_v2  ;;  %602 = vmatpush3.bf16.msra.mxu1 %v611_v2 }
  0x44   :  { %582 = vmatmul.mubr.msk.bf16.vlgmr.msra.gmra.mrb[0].mxu0 %vm171_vm0, %v614_v5  ;;  %590 = vmatmul.mubr.msk.bf16.vlgmr.msra.gmra.mrb[0].mxu1 %vm171_vm0, %v615_v6 }
  0x45   :  { %585 = vmatprep.mubr.msk.bf16.mxu0 %vm171_vm0, %v616_v7  ;;  %593 = vmatprep.mubr.msk.bf16.mxu1 %vm171_vm0, %v617_v8 }
  0x4c   :  { %586 = vmatmul.mubr.msk.bf16.gmra.mrb[4].mxu0 %vm171_vm0, %v618_v9  ;;  %594 = vmatmul.mubr.msk.bf16.gmra.mrb[4].mxu1 %vm171_vm0, %v619_v10 }
 0x117   :  { %v583_v11 = vpop.f32.mrb[0].mxu0  ;;  %v591_v13 = vpop.f32.mrb[0].mxu1 }
 0x118   :  { %v230_v14 = vpop.f32.mrb[1].mxu0  ;;  %v262_v15 = vpop.f32.mrb[1].mxu1  ;;  %v353_v18 = vadd.f32 %v583_v11, %v484_v12  ;;  %v361_v19 = vadd.f32 %v591_v13, %v484_v12 }
 0x119   :  { %v584_v16 = vpop.f32.mrb[2].mxu0  ;;  %v592_v17 = vpop.f32.mrb[2].mxu1  ;;  %v351_v24 = vadd.f32 %v484_v12, %v230_v14  ;;  %v359_v25 = vadd.f32 %v484_v12, %v262_v15 }
 0x11a   :  { %v354_v20 = vadd.f32 %v584_v16, %v484_v12  ;;  %v362_v21 = vadd.f32 %v592_v17, %v484_v12  ;;  %v233_v22 = vpop.f32.mrb[3].mxu0  ;;  %v265_v23 = vpop.f32.mrb[3].mxu1 }
 0x11b   :  { %v352_v26 = vadd.f32 %v484_v12, %v233_v22  ;;  %v360_v27 = vadd.f32 %v484_v12, %v265_v23 }
 0x11c   :  { %v525_v28 = vpack.c.bf16 %v354_v20, %v353_v18  ;;  %v545_v29 = vpack.c.bf16 %v362_v21, %v361_v19 }
 0x11d   :  { %v520_v30 = vpack.c.bf16 %v352_v26, %v351_v24  ;;  %v540_v31 = vpack.c.bf16 %v360_v27, %v359_v25 }
 0x11e   :  { %557 = vst [vmem:[#allocation9 + $0x8] sm:$0xff] %v525_v28   ;;  %561 = vst [vmem:[#allocation9 + $0x28] sm:$0xff] %v545_v29  }
 0x11f   :  { %521 = vst [vmem:[#allocation9] sm:$0xff] %v520_v30   ;;  %560 = vst [vmem:[#allocation9 + $0x20] sm:$0xff] %v540_v31   ;;  %v587_v32 = vpop.f32.mrb[4].mxu0  ;;  %v595_v33 = vpop.f32.mrb[4].mxu1 }
 0x120   :  { %v246_v34 = vpop.f32.mrb[5].mxu0  ;;  %v278_v35 = vpop.f32.mrb[5].mxu1  ;;  %v357_v38 = vadd.f32 %v587_v32, %v484_v12  ;;  %v365_v39 = vadd.f32 %v595_v33, %v484_v12 }
 0x121   :  { %v588_v36 = vpop.f32.mrb[6].mxu0  ;;  %v596_v37 = vpop.f32.mrb[6].mxu1  ;;  %v355_v44 = vadd.f32 %v484_v12, %v246_v34  ;;  %v363_v45 = vadd.f32 %v484_v12, %v278_v35 }
 0x122   :  { %v358_v40 = vadd.f32 %v588_v36, %v484_v12  ;;  %v366_v41 = vadd.f32 %v596_v37, %v484_v12  ;;  %v249_v42 = vpop.f32.mrb[7].mxu0  ;;  %v281_v43 = vpop.f32.mrb[7].mxu1 }
 0x123   :  { %v356_v46 = vadd.f32 %v484_v12, %v249_v42  ;;  %v364_v47 = vadd.f32 %v484_v12, %v281_v43 }
 0x124   :  { %v535_v48 = vpack.c.bf16 %v358_v40, %v357_v38  ;;  %v555_v49 = vpack.c.bf16 %v366_v41, %v365_v39 }
 0x125   :  { %v530_v50 = vpack.c.bf16 %v356_v46, %v355_v44  ;;  %v550_v51 = vpack.c.bf16 %v364_v47, %v363_v45 }
 0x126   :  { %559 = vst [vmem:[#allocation9 + $0x18] sm:$0xff] %v535_v48   ;;  %563 = vst [vmem:[#allocation9 + $0x38] sm:$0xff] %v555_v49  }
 0x127   :  { %558 = vst [vmem:[#allocation9 + $0x10] sm:$0xff] %v530_v50   ;;  %562 = vst [vmem:[#allocation9 + $0x30] sm:$0xff] %v550_v51  }
 0x128   :  { %697 = shalt.err (!%p694_p0)
}
 0x129   :  { %s698_s28 = scalar_lea.hbm %s815_s3, 1024 }
 0x12a   :  { %p699_p1 = scmp.ne.s32.totalorder %s815_s3, %s698_s28  ;;  %p702_p2 = scmp.lt.u32.totalorder %s698_s28, %s815_s3 }
 0x12c   :  { %p704_p3 = pnand %p702_p2, %p699_p1 }
 0x12e   :  { %707 = shalt.err (!%p704_p3)
}
 0x12f   :  { %458 = dma.vmem_to_hbm [thread:$0]  %s453_s22, 1024, %s815_s3, [#allocation5], %s716_s24, %s716_s24, %s717_s25  }
 0x130   :  { %712 = dma.done.wait [#allocation5], 1024  }
 0x131   :  { %713 = vsyncadd [#allocation5], 4294966272 }
 0x132   :  { %462 = vsyncpa [#allocation4], 1 }
 0x133   :  { %463 = vsyncpa [#allocation7], 1 }
 0x134   :  { %464 = vsyncpa [#allocation5], 1 }

// kernel: detconb_forward.3
= control target key start
LH: loop header
LB: loop body
LE: loop exit
PB: predicated region body
PF: predicated region fallthrough
CT: control target
= control target key end

     0   :  { %14 = vsyncpa [#allocation3], 0  ;;  %s1265_s0 = inlined_call_operand.hbm [shape: s32[2,8,1], index: 0, kind: input, shape index: {}]   ;;  %s1266_s1 = inlined_call_operand.hbm [shape: s32[2,1,64], index: 1, kind: input, shape index: {}]   ;;  %s1267_s2 = inlined_call_operand.hbm [shape: bf16[2,64,128], index: 2, kind: input, shape index: {}]   ;;  %s1268_s3 = inlined_call_operand.hbm [shape: bf16[128,256], index: 3, kind: input, shape index: {}]   ;;  %s1269_s4 = inlined_call_operand.hbm [shape: f32[1,256], index: 4, kind: input, shape index: {}]   ;;  %s1270_s5 = inlined_call_operand.hbm [shape: bf16[256,128], index: 5, kind: input, shape index: {}]   ;;  %s1271_s6 = inlined_call_operand.hbm [shape: f32[1,128], index: 6, kind: input, shape index: {}]   ;;  %s1272_s7 = inlined_call_operand.hbm [shape: f32[2,8,128], index: 7, kind: output, shape index: {0}]   ;;  %s1273_s8 = inlined_call_operand.hbm [shape: f32[2,8,128], index: 8, kind: output, shape index: {1}]  }
   0x1   :  { %15 = vsyncpa [#allocation6], 0 }
   0x2   :  { %16 = vsyncpa [#allocation9], 0 }
   0x3   :  { %17 = vsyncpa [#allocation12], 0 }
   0x4   :  { %18 = vsyncpa [#allocation4], 0 }
   0x5   :  { %19 = vsyncpa [#allocation16], 0  ;;  %s1069_s27 = smov [#allocation5]   ;;  %s859_s9 = scalar_lea.hbm %s1266_s1, 32 }
   0x6   :  { %s37_s28 = sshll.u32 %s1069_s27, 4  ;;  %p860_p0 = scmp.ne.s32.totalorder %s1266_s1, %s859_s9  ;;  %s38_s28 = int_to_ptr.vmem [resolvable:$true] %s37_s28 }
   0x7   :  { %p863_p1 = scmp.lt.u32.totalorder %s859_s9, %s1266_s1 }
   0x9   :  { %p865_p2 = pnand %p863_p1, %p860_p0 }
   0xb   :  { %868 = shalt.err (!%p865_p2)
}
   0xc   :  { %s869_s14 = scalar_lea.vmem %s38_s28, 32  ;;  %p874_p4 = scmp.lt.s32.totalorder %s38_s28, %s38_s28 }
   0xd   :  { %p870_p3 = scmp.ne.s32.totalorder %s38_s28, %s869_s14  ;;  %p875_p5 = scmp.lt.s32.totalorder %s869_s14, %s869_s14 }
   0xf   :  { %p876_p6 = por %p875_p5, %p874_p4 }
  0x11   :  { %p877_p7 = pnand %p876_p6, %p870_p3 }
  0x13   :  { %880 = shalt.err (!%p877_p7)
}
  0x14   :  { %s1070_s15 = smov 16   ;;  %s1071_s16 = smov 1  }
  0x15   :  { %43 = dma.hbm_to_vmem [thread:$0]  %s1266_s1, 32, %s38_s28, [#allocation6], %s1070_s15, %s1070_s15, %s1071_s16  }
  0x16   :  { %s1072_s19 = smov [#allocation8]   ;;  %s881_s23 = scalar_lea.hbm %s1268_s3, 2048 }
  0x17   :  { %s61_s20 = sshll.u32 %s1072_s19, 4  ;;  %p882_p8 = scmp.ne.s32.totalorder %s1268_s3, %s881_s23  ;;  %s62_s20 = int_to_ptr.vmem [resolvable:$true] %s61_s20 }
  0x18   :  { %p885_p9 = scmp.lt.u32.totalorder %s881_s23, %s1268_s3 }
  0x1a   :  { %p887_p10 = pnand %p885_p9, %p882_p8 }
  0x1c   :  { %890 = shalt.err (!%p887_p10)
}
  0x1d   :  { %s891_s29 = scalar_lea.vmem %s62_s20, 2048  ;;  %p896_p12 = scmp.lt.s32.totalorder %s62_s20, %s62_s20 }
  0x1e   :  { %p892_p11 = scmp.ne.s32.totalorder %s62_s20, %s891_s29  ;;  %p897_p13 = scmp.lt.s32.totalorder %s891_s29, %s891_s29 }
  0x20   :  { %p898_p0 = por %p897_p13, %p896_p12 }
  0x22   :  { %p899_p1 = pnand %p898_p0, %p892_p11 }
  0x24   :  { %902 = shalt.err (!%p899_p1)
}
  0x25   :  { %s1073_s1 = smov 128   ;;  %s1074_s28 = smov 8  }
  0x26   :  { %67 = dma.hbm_to_vmem [thread:$0]  %s1268_s3, 2048, %s62_s20, [#allocation9], %s1073_s1, %s1073_s1, %s1074_s28  }
  0x27   :  { %s1075_s10 = smov [#allocation11]   ;;  %s1076_s12 = smov [#allocation2]  }
  0x28   :  { %s83_s11 = sshll.u32 %s1075_s10, 4  ;;  %s25_s13 = sshll.u32 %s1076_s12, 4  ;;  %s84_s11 = int_to_ptr.vmem [resolvable:$true] %s83_s11  ;;  %s1159_s13 = int_to_ptr.vmem [resolvable:$true] %s25_s13 }
  0x29   :  { %s903_s16 = scalar_lea.hbm %s1270_s5, 2048 }
  0x2a   :  { %p904_p2 = scmp.ne.s32.totalorder %s1270_s5, %s903_s16  ;;  %p907_p3 = scmp.lt.u32.totalorder %s903_s16, %s1270_s5 }
  0x2c   :  { %p909_p4 = pnand %p907_p3, %p904_p2 }
  0x2e   :  { %912 = shalt.err (!%p909_p4)
}
  0x2f   :  { %s913_s3 = scalar_lea.vmem %s84_s11, 2048  ;;  %p918_p6 = scmp.lt.s32.totalorder %s84_s11, %s84_s11 }
  0x30   :  { %p914_p5 = scmp.ne.s32.totalorder %s84_s11, %s913_s3  ;;  %p919_p7 = scmp.lt.s32.totalorder %s913_s3, %s913_s3 }
  0x32   :  { %p920_p8 = por %p919_p7, %p918_p6 }
  0x34   :  { %p921_p9 = pnand %p920_p8, %p914_p5 }
  0x36   :  { %924 = shalt.err (!%p921_p9)
}
  0x37   :  { %s1077_s20 = smov 64   ;;  %s1078_s22 = smov 4  }
  0x38   :  { %89 = dma.hbm_to_vmem [thread:$0]  %s1270_s5, 2048, %s84_s11, [#allocation12], %s1077_s20, %s1077_s20, %s1078_s22  }
  0x39   :  { %s925_s27 = scalar_lea.hbm %s1265_s0, 256 }
  0x3a   :  { %p926_p10 = scmp.ne.s32.totalorder %s1265_s0, %s925_s27  ;;  %p929_p11 = scmp.lt.u32.totalorder %s925_s27, %s1265_s0 }
  0x3c   :  { %p931_p12 = pnand %p929_p11, %p926_p10 }
  0x3e   :  { %934 = shalt.err (!%p931_p12)
}
  0x3f   :  { %s935_s12 = scalar_lea.vmem %s1159_s13, 256  ;;  %p940_p0 = scmp.lt.s32.totalorder %s1159_s13, %s1159_s13 }
  0x40   :  { %p936_p13 = scmp.ne.s32.totalorder %s1159_s13, %s935_s12  ;;  %p941_p1 = scmp.lt.s32.totalorder %s935_s12, %s935_s12 }
  0x42   :  { %p942_p2 = por %p941_p1, %p940_p0 }
  0x44   :  { %p943_p3 = pnand %p942_p2, %p936_p13 }
  0x46   :  { %946 = shalt.err (!%p943_p3)
}
  0x47   :  { %31 = dma.hbm_to_vmem [thread:$0]  %s1265_s0, 256, %s1159_s13, [#allocation3], %s1073_s1, %s1073_s1, %s1074_s28  }
  0x48   :  { %s1079_s14 = smov [#allocation7]   ;;  %s1080_s16 = smov [#allocation10]  }
  0x49   :  { %s49_s15 = sshll.u32 %s1079_s14, 4  ;;  %s74_s17 = sshll.u32 %s1080_s16, 4  ;;  %s50_s15 = int_to_ptr.vmem [resolvable:$true] %s49_s15  ;;  %s75_s17 = int_to_ptr.vmem [resolvable:$true] %s74_s17 }
  0x4a   :  { %s947_s21 = scalar_lea.hbm %s1267_s2, 1024 }
  0x4b   :  { %p948_p4 = scmp.ne.s32.totalorder %s1267_s2, %s947_s21  ;;  %p951_p5 = scmp.lt.u32.totalorder %s947_s21, %s1267_s2 }
  0x4d   :  { %p953_p6 = pnand %p951_p5, %p948_p4 }
  0x4f   :  { %956 = shalt.err (!%p953_p6)
}
  0x50   :  { %s957_s0 = scalar_lea.vmem %s50_s15, 1024  ;;  %p962_p8 = scmp.lt.s32.totalorder %s50_s15, %s50_s15 }
  0x51   :  { %p958_p7 = scmp.ne.s32.totalorder %s50_s15, %s957_s0  ;;  %p963_p9 = scmp.lt.s32.totalorder %s957_s0, %s957_s0 }
  0x53   :  { %p964_p10 = por %p963_p9, %p962_p8 }
  0x55   :  { %p965_p11 = pnand %p964_p10, %p958_p7 }
  0x57   :  { %968 = shalt.err (!%p965_p11)
}
  0x58   :  { %55 = dma.hbm_to_vmem [thread:$0]  %s1267_s2, 1024, %s50_s15, [#allocation6], %s1077_s20, %s1077_s20, %s1078_s22  }
  0x59   :  { %s969_s30 = scalar_lea.hbm %s1269_s4, 32 }
  0x5a   :  { %p970_p12 = scmp.ne.s32.totalorder %s1269_s4, %s969_s30  ;;  %p973_p13 = scmp.lt.u32.totalorder %s969_s30, %s1269_s4 }
  0x5c   :  { %p975_p0 = pnand %p973_p13, %p970_p12 }
  0x5e   :  { %978 = shalt.err (!%p975_p0)
}
  0x5f   :  { %s979_s11 = scalar_lea.vmem %s75_s17, 32  ;;  %p984_p2 = scmp.lt.s32.totalorder %s75_s17, %s75_s17 }
  0x60   :  { %p980_p1 = scmp.ne.s32.totalorder %s75_s17, %s979_s11  ;;  %p985_p3 = scmp.lt.s32.totalorder %s979_s11, %s979_s11 }
  0x62   :  { %p986_p4 = por %p985_p3, %p984_p2 }
  0x64   :  { %p987_p5 = pnand %p986_p4, %p980_p1 }
  0x66   :  { %990 = shalt.err (!%p987_p5)
}
  0x67   :  { %77 = dma.hbm_to_vmem [thread:$0]  %s1269_s4, 32, %s75_s17, [#allocation9]  }
  0x68   :  { %s1081_s22 = smov [#allocation13]   ;;  %s991_s18 = scalar_lea.hbm %s1271_s6, 16 }
  0x69   :  { %s96_s14 = sshll.u32 %s1081_s22, 4  ;;  %p992_p6 = scmp.ne.s32.totalorder %s1271_s6, %s991_s18  ;;  %s97_s14 = int_to_ptr.vmem [resolvable:$true] %s96_s14 }
  0x6a   :  { %p995_p7 = scmp.lt.u32.totalorder %s991_s18, %s1271_s6 }
  0x6c   :  { %p997_p8 = pnand %p995_p7, %p992_p6 }
  0x6e   :  { %1000 = shalt.err (!%p997_p8)
}
  0x6f   :  { %s1001_s24 = scalar_lea.vmem %s97_s14, 16  ;;  %s1005_s4 = scalar_lea.vmem %s97_s14, 32 }
  0x70   :  { %p1002_p9 = scmp.ne.s32.totalorder %s97_s14, %s1001_s24  ;;  %p1006_p10 = scmp.lt.s32.totalorder %s97_s14, %s97_s14 }
  0x71   :  { %p1007_p11 = scmp.lt.s32.totalorder %s1005_s4, %s1001_s24 }
  0x73   :  { %p1008_p12 = por %p1007_p11, %p1006_p10 }
  0x75   :  { %p1009_p13 = pnand %p1008_p12, %p1002_p9 }
  0x77   :  { %1012 = shalt.err (!%p1009_p13)
}
  0x78   :  { %99 = dma.hbm_to_vmem [thread:$0]  %s1271_s6, 16, %s97_s14, [#allocation12]  }
  0x79   :  { %1057 = dma.done.wait [#allocation3], 256  }
  0x7a   :  { %1058 = vsyncadd [#allocation3], 4294967040 }
  0x7b   :  { %1059 = dma.done.wait [#allocation6], 1056  }
  0x7c   :  { %1060 = vsyncadd [#allocation6], 4294966240 }
  0x7d   :  { %1061 = dma.done.wait [#allocation9], 2080  }
  0x7e   :  { %1062 = vsyncadd [#allocation9], 4294965216 }
  0x7f   :  { %1063 = dma.done.wait [#allocation12], 2064  }
  0x80   :  { %1064 = vsyncadd [#allocation12], 4294965232  ;;  %v1082_v0 = vmov 0   ;;  %v1083_v1 = vmov 0.0   ;;  %v122_v2 = vld [vmem:[#allocation2] sm:$0xff]  ;;  %v123_v3 = vld [vmem:[#allocation2 + $0x8] sm:$0xff] }
  0x81   :  { %806 = vset.pattern.permute.xlu0 %v1082_v0  ;;  %764 = vmatprep.subr.bf16.mxu0 %v1083_v1  ;;  %v807_v4 = vld [vmem:[#allocation7] sm:$0xff]   ;;  %v808_v5 = vld [vmem:[#allocation7 + $0x8] sm:$0xff]   ;;  %vm1084_vm0 = vmmov 0   ;;  %v810_v8 = vld [vmem:[#allocation7 + $0x10] sm:$0xff]   ;;  %vm188_vm1 = vcmask 523264   ;;  %s1085_s6 = smov [#allocation14]  }
  0x82   :  { %776 = vmatprep.subr.bf16.mxu1 %v1083_v1  ;;  %127 = vperm.xlu0 %806, %v122_v2   ;;  %v809_v6 = vld [vmem:[#allocation7 + $0x20] sm:$0xff]   ;;  %v811_v7 = vld [vmem:[#allocation7 + $0x28] sm:$0xff]   ;;  %v812_v9 = vld [vmem:[#allocation7 + $0x18] sm:$0xff]   ;;  %s654_s0 = sshll.u32 %s1085_s6, 4  ;;  %s655_s0 = int_to_ptr.vmem [resolvable:$true] %s654_s0 }
  0x83   :  { %772 = vmatprep.mubr.msk.bf16.mxu0 %vm1084_vm0, %v1083_v1  ;;  %784 = vmatprep.mubr.msk.bf16.mxu1 %vm1084_vm0, %v1083_v1  ;;  %v813_v10 = vld [vmem:[#allocation7 + $0x30] sm:$0xff]   ;;  %v814_v11 = vld [vmem:[#allocation7 + $0x38] sm:$0xff]   ;;  %v815_v22 = vld [vmem:[#allocation8] ss:$8 sps:$4 sm:$0xff]   ;;  %s1013_s13 = scalar_lea.vmem %s655_s0, 256  ;;  %p1018_p1 = scmp.lt.s32.totalorder %s655_s0, %s655_s0 }
  0x84   :  { %765 = vmatpush3.bf16.msra.mxu0 %v807_v4  ;;  %777 = vmatpush3.bf16.msra.mxu1 %v809_v6  ;;  %v685_v12 = vld [vmem:[#allocation5] ss:$0 sm:$0xff]  ;;  %v686_v15 = vld [vmem:[#allocation5 + $0x1] ss:$0 sm:$0xff]  ;;  %v817_v23 = vld [vmem:[#allocation8 + $0x4] ss:$8 sps:$4 sm:$0xff]   ;;  %p1014_p0 = scmp.ne.s32.totalorder %s655_s0, %s1013_s13  ;;  %p1019_p2 = scmp.lt.s32.totalorder %s1013_s13, %s1013_s13 }
  0x85   :  { %766 = vmatprep.subr.bf16.mxu0 %v1083_v1  ;;  %778 = vmatprep.subr.bf16.mxu1 %v1083_v1  ;;  %v820_v24 = vld [vmem:[#allocation8 + $0x14] ss:$8 sps:$4 sm:$0xff]   ;;  %v818_v25 = vld [vmem:[#allocation8 + $0x10] ss:$8 sps:$4 sm:$0xff]   ;;  %v823_v26 = vld [vmem:[#allocation8 + $0x24] ss:$8 sps:$4 sm:$0xff]  }
  0x86   :  { %130 = vperm.xlu0 %806, %v123_v3   ;;  %v821_v27 = vld [vmem:[#allocation8 + $0x20] ss:$8 sps:$4 sm:$0xff]   ;;  %v826_v28 = vld [vmem:[#allocation8 + $0x34] ss:$8 sps:$4 sm:$0xff]   ;;  %v824_v29 = vld [vmem:[#allocation8 + $0x30] ss:$8 sps:$4 sm:$0xff]   ;;  %p1020_p3 = por %p1019_p2, %p1018_p1 }
  0x87   :  { %v829_v30 = vld [vmem:[#allocation8 + $0x44] ss:$8 sps:$4 sm:$0xff]   ;;  %v827_v31 = vld [vmem:[#allocation8 + $0x40] ss:$8 sps:$4 sm:$0xff]   ;;  %v832_v32 = vld [vmem:[#allocation8 + $0x54] ss:$8 sps:$4 sm:$0xff]  }
  0x88   :  { %767 = vmatpush3.bf16.msra.mxu0 %v808_v5  ;;  %779 = vmatpush3.bf16.msra.mxu1 %v811_v7  ;;  %v830_v33 = vld [vmem:[#allocation8 + $0x50] ss:$8 sps:$4 sm:$0xff]   ;;  %v835_v34 = vld [vmem:[#allocation8 + $0x64] ss:$8 sps:$4 sm:$0xff]   ;;  %v833_v35 = vld [vmem:[#allocation8 + $0x60] ss:$8 sps:$4 sm:$0xff]   ;;  %v332_v7 = vlaneseq  ;;  %p1021_p4 = pnand %p1020_p3, %p1014_p0 }
  0x89   :  { %768 = vmatprep.subr.bf16.mxu0 %v1083_v1  ;;  %780 = vmatprep.subr.bf16.mxu1 %v1083_v1  ;;  %v838_v36 = vld [vmem:[#allocation8 + $0x74] ss:$8 sps:$4 sm:$0xff]   ;;  %v836_v37 = vld [vmem:[#allocation8 + $0x70] ss:$8 sps:$4 sm:$0xff]   ;;  %v839_v38 = vld [vmem:[#allocation11 + $0x40] sm:$0xff]  }
  0x8a   :  { %v840_v39 = vld [vmem:[#allocation11] sm:$0xff]   ;;  %v841_v40 = vld [vmem:[#allocation11 + $0x48] sm:$0xff]   ;;  %v843_v42 = vld [vmem:[#allocation11 + $0x50] sm:$0xff]  }
  0x8b   :  { %v842_v41 = vld [vmem:[#allocation11 + $0x8] sm:$0xff]   ;;  %v844_v43 = vld [vmem:[#allocation11 + $0x10] sm:$0xff]   ;;  %v845_v44 = vld [vmem:[#allocation11 + $0x58] sm:$0xff]  }
  0x8c   :  { %769 = vmatpush3.bf16.msra.mxu0 %v810_v8  ;;  %781 = vmatpush3.bf16.msra.mxu1 %v813_v10  ;;  %v846_v45 = vld [vmem:[#allocation11 + $0x18] sm:$0xff]   ;;  %v847_v46 = vld [vmem:[#allocation11 + $0x60] sm:$0xff]   ;;  %v849_v48 = vld [vmem:[#allocation11 + $0x68] sm:$0xff]   ;;  %v333_v8 = vshrl.u32 %v332_v7, 7 }
  0x8d   :  { %770 = vmatprep.subr.bf16.mxu0 %v1083_v1  ;;  %782 = vmatprep.subr.bf16.mxu1 %v1083_v1  ;;  %v848_v47 = vld [vmem:[#allocation11 + $0x20] sm:$0xff]   ;;  %v850_v2 = vld [vmem:[#allocation11 + $0x28] sm:$0xff]   ;;  %v851_v3 = vld [vmem:[#allocation11 + $0x70] sm:$0xff]  }
  0x8e   :  { %v852_v4 = vld [vmem:[#allocation11 + $0x30] sm:$0xff]   ;;  %v853_v5 = vld [vmem:[#allocation11 + $0x78] sm:$0xff]  }
  0x8f   :  { %v854_v6 = vld [vmem:[#allocation11 + $0x38] sm:$0xff]  }
  0x90   :  { %771 = vmatpush3.bf16.msra.mxu0 %v812_v9  ;;  %783 = vmatpush3.bf16.msra.mxu1 %v814_v11  ;;  %v334_v9 = vsub.s32 0, %v333_v8  ;;  %v330_v10 = vld [vmem:[#allocation10] sm:$0x3]  ;;  %v338_v11 = vsub.s32 1, %v333_v8 }
  0x91   :  { %422 = vmatprep.subr.bf16.mxu0 %v817_v23  ;;  %742 = vmatprep.subr.bf16.mxu1 %v839_v38 }
 0x101   :  { %v128_v13 = vpop.permute.xlu0 %127 }
 0x102   :  { %vm140_vm2 = vcmp.eq.s32.totalorder %v128_v13, %v685_v12  ;;  %v335_v12 = vrot.slane %v330_v10, %v334_v9  ;;  %v339_v13 = vrot.slane %v330_v10, %v338_v11 }
 0x103   :  { %v687_v14 = vsel %vm140_vm2, 1.0, %v1083_v1 }
 0x104   :  { %v299_v16 = vsel %vm188_vm1, %v687_v14, 0.0  ;;  %v146_v17 = vpack.c.bf16 %v687_v14, %v687_v14 }
 0x105   :  { %300 = vadd.xlane.f32.xlu1 %v299_v16  ;;  %v131_v18 = vpop.permute.xlu0 %130 }
 0x106   :  { %vm141_vm3 = vcmp.eq.s32.totalorder %v131_v18, %v686_v15  ;;  %773 = vmatmul.mubr.msk.bf16.vlgmr.msra.gmra.mrb[0].mxu0 %vm188_vm1, %v146_v17 }
 0x107   :  { %v688_v19 = vsel %vm141_vm3, 1.0, %v1083_v1  ;;  %454 = vmatprep.mubr.bf16.mxu0 %v1082_v0  ;;  %423 = vmatpush1.bf16.msra.mxu0 %v815_v22 }
 0x108   :  { %v302_v20 = vsel %vm188_vm1, %v688_v19, 0.0  ;;  %v147_v21 = vpack.c.bf16 %v688_v19, %v688_v19  ;;  %424 = vmatprep.subr.bf16.mxu0 %v820_v24 }
 0x109   :  { %303 = vadd.xlane.f32.xlu1 %v302_v20 }
 0x10a   :  { %785 = vmatmul.mubr.msk.bf16.vlgmr.msra.gmra.mrb[0].mxu1 %vm188_vm1, %v147_v21 }
 0x10b   :  { %425 = vmatpush1.bf16.msra.mxu0 %v818_v25  ;;  %743 = vmatpush3.bf16.msra.mxu1 %v840_v39 }
 0x10c   :  { %426 = vmatprep.subr.bf16.mxu0 %v823_v26  ;;  %744 = vmatprep.subr.bf16.mxu1 %v841_v40 }
 0x10f   :  { %427 = vmatpush1.bf16.msra.mxu0 %v821_v27  ;;  %745 = vmatpush3.bf16.msra.mxu1 %v842_v41 }
 0x110   :  { %428 = vmatprep.subr.bf16.mxu0 %v826_v28  ;;  %746 = vmatprep.subr.bf16.mxu1 %v843_v42 }
 0x113   :  { %429 = vmatpush1.bf16.msra.mxu0 %v824_v29  ;;  %747 = vmatpush3.bf16.msra.mxu1 %v844_v43 }
 0x114   :  { %430 = vmatprep.subr.bf16.mxu0 %v829_v30  ;;  %748 = vmatprep.subr.bf16.mxu1 %v845_v44 }
 0x117   :  { %431 = vmatpush1.bf16.msra.mxu0 %v827_v31  ;;  %749 = vmatpush3.bf16.msra.mxu1 %v846_v45 }
 0x118   :  { %432 = vmatprep.subr.bf16.mxu0 %v832_v32  ;;  %750 = vmatprep.subr.bf16.mxu1 %v847_v46 }
 0x11b   :  { %433 = vmatpush1.bf16.msra.mxu0 %v830_v33  ;;  %751 = vmatpush3.bf16.msra.mxu1 %v848_v47 }
 0x11c   :  { %434 = vmatprep.subr.bf16.mxu0 %v835_v34  ;;  %752 = vmatprep.subr.bf16.mxu1 %v849_v48 }
 0x11f   :  { %435 = vmatpush1.bf16.msra.mxu0 %v833_v35  ;;  %753 = vmatpush3.bf16.msra.mxu1 %v850_v2 }
 0x120   :  { %436 = vmatprep.subr.bf16.mxu0 %v838_v36  ;;  %754 = vmatprep.subr.bf16.mxu1 %v851_v3 }
 0x123   :  { %437 = vmatpush1.bf16.msra.mxu0 %v836_v37  ;;  %755 = vmatpush3.bf16.msra.mxu1 %v852_v4 }
 0x124   :  { %756 = vmatprep.subr.bf16.mxu1 %v853_v5 }
 0x127   :  { %757 = vmatpush3.bf16.msra.mxu1 %v854_v6 }
 0x192   :  { %v301_v49 = vpop.xlane.xlu1 %300 }
 0x193   :  { %v305_v50 = vadd.f32 1e-08, %v301_v49 }
 0x195   :  { %855 = vrcp.f32 %v305_v50 }
 0x196   :  { %v304_v51 = vpop.xlane.xlu1 %303 }
 0x197   :  { %v306_v52 = vadd.f32 1e-08, %v304_v51 }
 0x199   :  { %857 = vrcp.f32 %v306_v52 }
 0x19f   :  { %v856_v53 = vpop.eup %855 }
 0x1a3   :  { %v858_v59 = vpop.eup %857 }
 0x1d9   :  { %v226_v54 = vpop.f32.mrb[0].mxu0 }
 0x1da   :  { %v309_v55 = vmul.f32 %v856_v53, %v226_v54  ;;  %v774_v56 = vpop.f32.mrb[1].mxu0 }
 0x1db   :  { %v229_v57 = vpop.f32.mrb[2].mxu0 }
 0x1dc   :  { %311 = vst [vmem:[#allocation14] sm:$0xff] %v309_v55  ;;  %v775_v58 = vpop.f32.mrb[3].mxu0 }
 0x1dd   :  { %v293_v60 = vpop.f32.mrb[0].mxu1 }
 0x1de   :  { %v310_v61 = vmul.f32 %v858_v59, %v293_v60  ;;  %v786_v62 = vpop.f32.mrb[1].mxu1 }
 0x1df   :  { %v296_v63 = vpop.f32.mrb[2].mxu1 }
 0x1e0   :  { %312 = vst [vmem:[#allocation14 + $0x8] sm:$0xff] %v310_v61  ;;  %v313_v0 = vpack.c.bf16 %v310_v61, %v309_v55  ;;  %v787_v1 = vpop.f32.mrb[3].mxu1 }
 0x1e2   :  { %455 = vmatmul.mubr.bf16.vlgmr.msra.gmra.mrb[4].mxu0 %v313_v0 }
 0x2b5   :  { %v456_v14 = vpop.f32.mrb[4].mxu0 }
 0x2b6   :  { %v457_v15 = vadd.f32 %v456_v14, %v335_v12  ;;  %v458_v16 = vpop.f32.mrb[5].mxu0 }
 0x2b7   :  { %v459_v17 = vadd.f32 %v458_v16, %v339_v13  ;;  %v460_v18 = vpop.f32.mrb[6].mxu0 }
 0x2b8   :  { %v461_v19 = vadd.f32 %v460_v18, %v335_v12  ;;  %v462_v20 = vpop.f32.mrb[7].mxu0  ;;  %v465_v22 = vmax.f32 %v457_v15, 0.0 }
 0x2b9   :  { %v463_v21 = vadd.f32 %v462_v20, %v339_v13  ;;  %v466_v24 = vmax.f32 %v459_v17, 0.0 }
 0x2ba   :  { %v467_v23 = vmax.f32 %v461_v19, 0.0 }
 0x2bb   :  { %v468_v25 = vmax.f32 %v463_v21, 0.0 }
 0x2bc   :  { %v469_v26 = vpack.c.bf16 %v467_v23, %v465_v22 }
 0x2bd   :  { %v470_v27 = vpack.c.bf16 %v468_v25, %v466_v24 }
 0x2bf   :  { %638 = vmatprep.mubr.bf16.mxu1 %v470_v27 }
 0x2c0   :  { %639 = vmatmul.mubr.bf16.vlgmr.msra.gmra.mrb[4].mxu1 %v469_v26 }
 0x2c1   :  { %1024 = shalt.err (!%p1021_p4)
}
 0x2c2   :  { %s1025_s29 = scalar_lea.hbm %s1272_s7, 256 }
 0x2c3   :  { %p1026_p5 = scmp.ne.s32.totalorder %s1272_s7, %s1025_s29  ;;  %p1029_p6 = scmp.lt.u32.totalorder %s1025_s29, %s1272_s7 }
 0x2c5   :  { %p1031_p7 = pnand %p1029_p6, %p1026_p5 }
 0x2c7   :  { %1034 = shalt.err (!%p1031_p7)
}
 0x2c8   :  { %660 = dma.vmem_to_hbm [thread:$0]  %s655_s0, 256, %s1272_s7, [#allocation4], %s1073_s1, %s1073_s1, %s1074_s28   ;;  %v715_v29 = vld [vmem:[#allocation13] ss:$0 sm:$0xff] }
 0x2c9   :  { %s1086_s2 = smov [#allocation15]  }
 0x2ca   :  { %s666_s20 = sshll.u32 %s1086_s2, 4  ;;  %s667_s20 = int_to_ptr.vmem [resolvable:$true] %s666_s20 }
 0x2cb   :  { %s1035_s22 = scalar_lea.vmem %s667_s20, 256  ;;  %p1040_p9 = scmp.lt.s32.totalorder %s667_s20, %s667_s20 }
 0x2cc   :  { %p1036_p8 = scmp.ne.s32.totalorder %s667_s20, %s1035_s22  ;;  %p1041_p10 = scmp.lt.s32.totalorder %s1035_s22, %s1035_s22 }
 0x2ce   :  { %p1042_p11 = por %p1041_p10, %p1040_p9 }
 0x2d0   :  { %p1043_p12 = pnand %p1042_p11, %p1036_p8 }
 0x393   :  { %v758_v28 = vpop.f32.mrb[4].mxu1 }
 0x394   :  { %v759_v30 = vpop.f32.mrb[5].mxu1 }
 0x395   :  { %v760_v31 = vadd.f32 %v759_v30, %v758_v28  ;;  %v761_v32 = vpop.f32.mrb[6].mxu1 }
 0x396   :  { %v762_v33 = vpop.f32.mrb[7].mxu1 }
 0x397   :  { %v641_v34 = vadd.f32 %v760_v31, %v715_v29  ;;  %v763_v35 = vadd.f32 %v762_v33, %v761_v32 }
 0x399   :  { %647 = vst [vmem:[#allocation15] sm:$0xff] %v641_v34  ;;  %v644_v36 = vadd.f32 %v763_v35, %v715_v29 }
 0x39b   :  { %648 = vst [vmem:[#allocation15 + $0x8] sm:$0xff] %v644_v36 }
 0x39c   :  { %1046 = shalt.err (!%p1043_p12)
}
 0x39d   :  { %s1047_s15 = scalar_lea.hbm %s1273_s8, 256 }
 0x39e   :  { %p1048_p13 = scmp.ne.s32.totalorder %s1273_s8, %s1047_s15  ;;  %p1051_p0 = scmp.lt.u32.totalorder %s1047_s15, %s1273_s8 }
 0x3a0   :  { %p1053_p1 = pnand %p1051_p0, %p1048_p13 }
 0x3a2   :  { %1056 = shalt.err (!%p1053_p1)
}
 0x3a3   :  { %672 = dma.vmem_to_hbm [thread:$0]  %s667_s20, 256, %s1273_s8, [#allocation16], %s1073_s1, %s1073_s1, %s1074_s28  }
 0x3a4   :  { %1065 = dma.done.wait [#allocation4], 256  }
 0x3a5   :  { %1066 = vsyncadd [#allocation4], 4294967040 }
 0x3a6   :  { %1067 = dma.done.wait [#allocation16], 256  }
 0x3a7   :  { %1068 = vsyncadd [#allocation16], 4294967040 }
 0x3a8   :  { %679 = vsyncpa [#allocation3], 1 }
 0x3a9   :  { %680 = vsyncpa [#allocation6], 1 }
 0x3aa   :  { %681 = vsyncpa [#allocation9], 1 }
 0x3ab   :  { %682 = vsyncpa [#allocation12], 1 }
 0x3ac   :  { %683 = vsyncpa [#allocation4], 1 }
 0x3ad   :  { %684 = vsyncpa [#allocation16], 1 }

</bundles_post_ra>
